<compile_context>
chip_gen: v7x
topology: tpu7x:2x2x1
jax: 0.10.0
libtpu: 0.0.40
codegen_flags: <defaults>
</compile_context>

<pallas_src>
import functools
import math

import jax
import jax.numpy as jnp
import numpy as np
from jax.experimental import pallas as pl
from jax.experimental.pallas import tpu as pltpu


def _round_up(x: int, m: int) -> int:
    return ((x + m - 1) // m) * m


def _cdiv(a: int, b: int) -> int:
    return -(-a // b)


def _chip_config():
    """Per-generation tuning defaults, with safe (v7x-like) fallbacks."""
    kind = ""
    try:
        kind = jax.devices()[0].device_kind.lower()
    except Exception:
        pass
    vmem_bytes = None
    try:
        vmem_bytes = int(pltpu.get_tpu_info().vmem_capacity_bytes)
    except Exception:
        pass
    if vmem_bytes is None:
        vmem_bytes = (128 << 20) if ("v5" in kind or "v6" in kind) else (64 << 20)
    # Leave >=16 MiB headroom for Mosaic internals; never request > ~100 MiB.
    vmem_cap = max(min(vmem_bytes - (16 << 20), 100 << 20), 32 << 20)
    is_v5 = "v5" in kind
    is_v6 = "v6" in kind
    return {
        "tm_target": 1024 if is_v6 else 512,  # v6e: 128 MiB VMEM allows bigger M tile
        "tn_target": 1024,
        "tk_target": 2048,
        "n_align": 128 if is_v5 else 256,     # 256-wide MXU on v6e/v7x
        "vmem_cap": vmem_cap,
    }


def _linear_kernel(x_ref, w_ref, b_ref, o_ref, acc_ref, *, cast_bf16):
    """Computes one (tm, tn) output tile; K is streamed along grid axis 2."""
    @pl.when(pl.program_id(2) == 0)
    def _init():
        acc_ref[...] = jnp.zeros_like(acc_ref)

    x = x_ref[...]
    if cast_bf16:
        # In-kernel cast: HBM read stays in the source dtype, the MXU runs at
        # full bf16 rate on v5e/v6e/v7x, accumulation stays f32.
        x = x.astype(jnp.bfloat16)
    acc_ref[...] += jnp.dot(x, w_ref[...], preferred_element_type=jnp.float32)

    @pl.when(pl.program_id(2) == pl.num_programs(2) - 1)
    def _finalize():
        o_ref[...] = (acc_ref[...] + b_ref[...]).astype(o_ref.dtype)


def time_distributed_linear(x, w, b, *, tm_target=None, tn_target=None,
                            tk_target=None, use_bf16_mxu=None, out_dtype=None):
    """TimeDistributed(Linear): apply Linear(w, b) over all leading dims of x.

    x: (batch, time, ..., hidden_in)
    w: (hidden_in, hidden_out)
    b: (hidden_out,)
    returns: (batch, time, ..., hidden_out)
    """
    if x.ndim <= 2:
        raise RuntimeError(f"No dimension to distribute: {x.shape}")

    lead_shape = x.shape[:-1]
    H_in = x.shape[-1]
    H_out = w.shape[-1]
    out_dtype = x.dtype if out_dtype is None else jnp.dtype(out_dtype)

    cfg = _chip_config()
    tm_target = cfg["tm_target"] if tm_target is None else tm_target
    tn_target = cfg["tn_target"] if tn_target is None else tn_target
    tk_target = cfg["tk_target"] if tk_target is None else tk_target
    if use_bf16_mxu is None:
        # bf16 MXU feed only where the matmul is plausibly compute-bound.
        use_bf16_mxu = H_in >= 512

    rows = math.prod(lead_shape)
    x_flat = x.reshape(rows, H_in)

    # ---- Tile selection (minimize padding waste) -----------------------------
    grid_m = _cdiv(rows, tm_target)
    tm = _round_up(_cdiv(rows, grid_m), 16)
    rows_p = grid_m * tm

    grid_n = _cdiv(H_out, tn_target)
    tn = _round_up(_cdiv(H_out, grid_n), 128)          # lane-dense stores
    if grid_n > 1:
        tn = _round_up(tn, cfg["n_align"])             # MXU-width alignment
    H_out_p = grid_n * tn

    if H_in <= tk_target or H_in % 128 != 0:
        tk, grid_k = H_in, 1                           # full-extent K block
    else:
        tk = tk_target - tk_target % 128
        while H_in % tk:                               # largest 128-multiple divisor
            tk -= 128
        grid_k = H_in // tk

    # ---- Padding (only when needed; sliced away afterwards) -----------------
    if rows_p != rows:
        x_flat = jnp.pad(x_flat, ((0, rows_p - rows), (0, 0)))
    if H_out_p != H_out:
        w = jnp.pad(w, ((0, 0), (0, H_out_p - H_out)))
        b = jnp.pad(b, (0, H_out_p - H_out))

    w = w.astype(jnp.bfloat16 if use_bf16_mxu else x_flat.dtype)
    b2d = b.reshape(1, H_out_p).astype(jnp.float32)

    # ---- VMEM budget: exact double-buffered tiles + accumulator + margin ----
    x_item = jnp.dtype(x_flat.dtype).itemsize
    w_item = jnp.dtype(w.dtype).itemsize
    o_item = jnp.dtype(out_dtype).itemsize
    need = (2 * tm * tk * x_item        # streamed x tiles (2 buffers)
            + 2 * tk * tn * w_item      # streamed W tiles (2 buffers)
            + 2 * tn * 4                # bias block
            + 2 * tm * tn * o_item      # output tiles (2 buffers)
            + tm * tn * 4               # f32 accumulator scratch
            + (4 << 20))                # margin for Mosaic internals
    vmem_limit = int(min(max(need, 16 << 20), cfg["vmem_cap"]))

    cost = pl.CostEstimate(
        flops=2 * rows_p * H_in * H_out_p,
        transcendentals=0,
        bytes_accessed=(rows_p * H_in * x_item + H_in * H_out_p * w_item
                        + H_out_p * 4 + rows_p * H_out_p * o_item),
    )

    kernel = functools.partial(_linear_kernel, cast_bf16=bool(use_bf16_mxu))

    out_flat = pl.pallas_call(
        kernel,
        out_shape=jax.ShapeDtypeStruct((rows_p, H_out_p), out_dtype),
        grid_spec=pltpu.PrefetchScalarGridSpec(
            num_scalar_prefetch=0,
            grid=(grid_m, grid_n, grid_k),
            in_specs=[
                pl.BlockSpec((tm, tk), lambda i, j, k: (i, k)),   # x
                pl.BlockSpec((tk, tn), lambda i, j, k: (k, j)),   # W
                pl.BlockSpec((1, tn), lambda i, j, k: (0, j)),    # bias
            ],
            out_specs=pl.BlockSpec((tm, tn), lambda i, j, k: (i, j)),
            scratch_shapes=[pltpu.VMEM((tm, tn), jnp.float32)],
        ),
        compiler_params=pltpu.CompilerParams(
            dimension_semantics=("parallel", "parallel", "arbitrary"),
            vmem_limit_bytes=vmem_limit,
        ),
        cost_estimate=cost,
    )(x_flat, w, b2d)

    # Drop row / lane padding only if any was added, then split leading dims.
    if rows_p != rows or H_out_p != H_out:
        out_flat = out_flat[:rows, :H_out]
    return out_flat.reshape(lead_shape + (H_out,))


if __name__ == "__main__":
    key = jax.random.PRNGKey(0)
    ks = jax.random.split(key, 9)

    def ref_linear(x, w, b):
        x64 = np.asarray(x, dtype=np.float64)
        w64 = np.asarray(w, dtype=np.float64)
        b64 = np.asarray(b, dtype=np.float64)
        r = x64.reshape(-1, x64.shape[-1]) @ w64 + b64
        return r.reshape(x.shape[:-1] + (w64.shape[-1],))

    # Test 1: small shapes, f32 path, single block (canonical (B, T, H) use).
    B, T, Hi, Ho = 2, 8, 32, 64
    x1 = jax.random.normal(ks[0], (B, T, Hi), dtype=jnp.float32)
    w1 = jax.random.normal(ks[1], (Hi, Ho), dtype=jnp.float32) * 0.05
    b1 = jax.random.normal(ks[2], (Ho,), dtype=jnp.float32) * 0.05
    o1 = jax.block_until_ready(time_distributed_linear(x1, w1, b1))
    assert o1.shape == (B, T, Ho)
    assert np.allclose(np.asarray(o1), ref_linear(x1, w1, b1), atol=2e-2, rtol=2e-2)

    # Test 2: forces M/N/K tiling plus row & lane padding, f32 accumulate path.
    B, T, Hi, Ho = 2, 100, 256, 320
    x2 = jax.random.normal(ks[3], (B, T, Hi), dtype=jnp.float32)
    w2 = jax.random.normal(ks[4], (Hi, Ho), dtype=jnp.float32) * 0.05
    b2 = jax.random.normal(ks[5], (Ho,), dtype=jnp.float32) * 0.05
    o2 = jax.block_until_ready(
        time_distributed_linear(x2, w2, b2, tm_target=128, tn_target=256,
                                tk_target=128, use_bf16_mxu=False))
    assert o2.shape == (B, T, Ho)
    assert np.allclose(np.asarray(o2), ref_linear(x2, w2, b2), atol=2e-2, rtol=2e-2)

    # Test 3: bf16 MXU path auto-selected (H_in >= 512).
    B, T, Hi, Ho = 2, 16, 512, 256
    x3 = jax.random.normal(ks[6], (B, T, Hi), dtype=jnp.float32)
    w3 = jax.random.normal(ks[7], (Hi, Ho), dtype=jnp.float32) * 0.05
    b3 = jax.random.normal(ks[8], (Ho,), dtype=jnp.float32) * 0.05
    o3 = jax.block_until_ready(time_distributed_linear(x3, w3, b3))
    assert o3.shape == (B, T, Ho)
    assert np.allclose(np.asarray(o3), ref_linear(x3, w3, b3), atol=1e-1, rtol=1e-1)

    print("KERNEL_OK")
</pallas_src>

<mosaic_0001>
module attributes {stable_mosaic.version = 11 : i64} {
  func.func @_linear_kernel(%arg0: i32, %arg1: i32, %arg2: i32, %arg3: memref<16x32xf32, #tpu.memory_space<vmem>>, %arg4: memref<32x128xf32, #tpu.memory_space<vmem>>, %arg5: memref<1x128xf32, #tpu.memory_space<vmem>>, %arg6: memref<16x128xf32, #tpu.memory_space<vmem>>, %arg7: memref<16x128xf32, #tpu.memory_space<vmem>>) attributes {dimension_semantics = [#tpu.dimension_semantics<parallel>, #tpu.dimension_semantics<parallel>, #tpu.dimension_semantics<arbitrary>], iteration_bounds = array<i64: 1, 1, 1>, scalar_prefetch = 0 : i64, scratch_operands = 1 : i64, tpu.core_type = #tpu.core_type<tc>, window_params = [{transform_indices = @transform_0, window_bounds = array<i64: 16, 32>}, {transform_indices = @transform_1, window_bounds = array<i64: 32, 128>}, {transform_indices = @transform_2, window_bounds = array<i64: 1, 128>}, {transform_indices = @transform_3, window_bounds = array<i64: 16, 128>}]} {
    %c0_i32 = arith.constant 0 : i32
    %0 = arith.cmpi eq, %arg2, %c0_i32 : i32
    %1 = arith.extui %0 : i1 to i32
    %c0_i32_0 = arith.constant 0 : i32
    %2 = arith.cmpi ne, %1, %c0_i32_0 : i32
    scf.if %2 {
      %cst_10 = arith.constant 0.000000e+00 : f32
      %12 = vector.broadcast %cst_10 : f32 to vector<16x128xf32>
      %c0_11 = arith.constant 0 : index
      %c0_12 = arith.constant 0 : index
      %13 = vector.load %arg7[%c0_11, %c0_12] : memref<16x128xf32, #tpu.memory_space<vmem>>, vector<16x128xf32>
      tpu.vector_store %arg7[%c0_11, %c0_12], %12 {strides = array<i32>} : memref<16x128xf32, #tpu.memory_space<vmem>>, vector<16x128xf32>,
    } else {
    }
    %c0 = arith.constant 0 : index
    %c0_1 = arith.constant 0 : index
    %3 = vector.load %arg3[%c0, %c0_1] : memref<16x32xf32, #tpu.memory_space<vmem>>, vector<16x32xf32>
    %c0_2 = arith.constant 0 : index
    %c0_3 = arith.constant 0 : index
    %4 = vector.load %arg7[%c0_2, %c0_3] : memref<16x128xf32, #tpu.memory_space<vmem>>, vector<16x128xf32>
    %c0_4 = arith.constant 0 : index
    %c0_5 = arith.constant 0 : index
    %5 = vector.load %arg4[%c0_4, %c0_5] : memref<32x128xf32, #tpu.memory_space<vmem>>, vector<32x128xf32>
    %cst = arith.constant dense<0.000000e+00> : vector<16x128xf32>
    %6 = tpu.matmul %3, %5, %cst {dimension_numbers = #tpu.dot_dimension_numbers<[1], [0], [0], [1], [0, 0, 1, 1], [], []>} : vector<16x32xf32>, vector<32x128xf32>, vector<16x128xf32> -> vector<16x128xf32>
    %7 = arith.addf %4, %6 : vector<16x128xf32>
    %c0_6 = arith.constant 0 : index
    %c0_7 = arith.constant 0 : index
    %8 = vector.load %arg7[%c0_6, %c0_7] : memref<16x128xf32, #tpu.memory_space<vmem>>, vector<16x128xf32>
    tpu.vector_store %arg7[%c0_6, %c0_7], %7 {strides = array<i32>} : memref<16x128xf32, #tpu.memory_space<vmem>>, vector<16x128xf32>,
    %c0_i32_8 = arith.constant 0 : i32
    %9 = arith.cmpi eq, %arg2, %c0_i32_8 : i32
    %10 = arith.extui %9 : i1 to i32
    %c0_i32_9 = arith.constant 0 : i32
    %11 = arith.cmpi ne, %10, %c0_i32_9 : i32
    scf.if %11 {
      %c0_10 = arith.constant 0 : index
      %c0_11 = arith.constant 0 : index
      %12 = vector.load %arg7[%c0_10, %c0_11] : memref<16x128xf32, #tpu.memory_space<vmem>>, vector<16x128xf32>
      %c0_12 = arith.constant 0 : index
      %c0_13 = arith.constant 0 : index
      %13 = vector.load %arg5[%c0_12, %c0_13] : memref<1x128xf32, #tpu.memory_space<vmem>>, vector<1x128xf32>
      %14 = vector.broadcast %13 : vector<1x128xf32> to vector<16x128xf32>
      %15 = arith.addf %12, %14 : vector<16x128xf32>
      %c0_14 = arith.constant 0 : index
      %c0_15 = arith.constant 0 : index
      %16 = vector.load %arg6[%c0_14, %c0_15] : memref<16x128xf32, #tpu.memory_space<vmem>>, vector<16x128xf32>
      tpu.vector_store %arg6[%c0_14, %c0_15], %15 {strides = array<i32>} : memref<16x128xf32, #tpu.memory_space<vmem>>, vector<16x128xf32>,
    } else {
    }
    return
  }
  func.func @transform_0(%arg0: i32, %arg1: i32, %arg2: i32) -> (i32, i32) {
    %c0_i32 = arith.constant 0 : i32
    return %arg0, %arg2 : i32, i32
  }
  func.func @transform_1(%arg0: i32, %arg1: i32, %arg2: i32) -> (i32, i32) {
    %c0_i32 = arith.constant 0 : i32
    return %arg2, %arg1 : i32, i32
  }
  func.func @transform_2(%arg0: i32, %arg1: i32, %arg2: i32) -> (i32, i32) {
    %c0_i32 = arith.constant 0 : i32
    %c0_i32_0 = arith.constant 0 : i32
    return %c0_i32, %arg1 : i32, i32
  }
  func.func @transform_3(%arg0: i32, %arg1: i32, %arg2: i32) -> (i32, i32) {
    %c0_i32 = arith.constant 0 : i32
    return %arg0, %arg1 : i32, i32
  }
}

</mosaic_0001>

<bundles_post_ra>
// kernel: tpu_custom_call.1
= control target key start
LH: loop header
LB: loop body
LE: loop exit
PB: predicated region body
PF: predicated region fallthrough
CT: control target
= control target key end

     0   :  { %8 = vsyncpa [#allocation4], 0  ;;  %s355_s0 = inlined_call_operand.hbm [shape: f32[16,32], index: 0, kind: input, shape index: {}]   ;;  %s356_s1 = inlined_call_operand.hbm [shape: f32[32,128], index: 1, kind: input, shape index: {}]   ;;  %s357_s2 = inlined_call_operand.vmem [shape: f32[1,128], index: 2, kind: input, shape index: {}]   ;;  %s358_s3 = inlined_call_operand.hbm [shape: f32[16,128], index: 3, kind: output, shape index: {}]  }
   0x1   :  { %9 = vsyncpa [#allocation7], 0 }
   0x2   :  { %10 = vsyncpa [#allocation5], 0  ;;  %s282_s12 = smov [#allocation3]   ;;  %s210_s16 = scalar_lea.hbm %s355_s0, 256 }
   0x3   :  { %s16_s13 = sshll.u32 %s282_s12, 4  ;;  %p211_p0 = scmp.ne.s32.totalorder %s355_s0, %s210_s16  ;;  %s17_s13 = int_to_ptr.vmem [resolvable:$true] %s16_s13 }
   0x4   :  { %p214_p1 = scmp.lt.u32.totalorder %s210_s16, %s355_s0 }
   0x6   :  { %p216_p2 = pnand %p214_p1, %p211_p0 }
   0x8   :  { %219 = shalt.err (!%p216_p2)
}
   0x9   :  { %s220_s21 = scalar_lea.vmem %s17_s13, 256  ;;  %p225_p4 = scmp.lt.s32.totalorder %s17_s13, %s17_s13 }
   0xa   :  { %p221_p3 = scmp.ne.s32.totalorder %s17_s13, %s220_s21  ;;  %p226_p5 = scmp.lt.s32.totalorder %s220_s21, %s220_s21 }
   0xc   :  { %p227_p6 = por %p226_p5, %p225_p4 }
   0xe   :  { %p228_p7 = pnand %p227_p6, %p221_p3 }
  0x10   :  { %231 = shalt.err (!%p228_p7)
}
  0x11   :  { %s283_s22 = smov 128   ;;  %s284_s23 = smov 8  }
  0x12   :  { %22 = dma.hbm_to_vmem [thread:$0]  %s355_s0, 256, %s17_s13, [#allocation4], %s283_s22, %s283_s22, %s284_s23  }
  0x13   :  { %s285_s26 = smov [#allocation6]   ;;  %s232_s30 = scalar_lea.hbm %s356_s1, 512 }
  0x14   :  { %s28_s27 = sshll.u32 %s285_s26, 4  ;;  %p233_p8 = scmp.ne.s32.totalorder %s356_s1, %s232_s30  ;;  %s29_s27 = int_to_ptr.vmem [resolvable:$true] %s28_s27 }
  0x15   :  { %p236_p9 = scmp.lt.u32.totalorder %s232_s30, %s356_s1 }
  0x17   :  { %p238_p10 = pnand %p236_p9, %p233_p8 }
  0x19   :  { %241 = shalt.err (!%p238_p10)
}
  0x1a   :  { %s242_s8 = scalar_lea.vmem %s29_s27, 512  ;;  %p247_p12 = scmp.lt.s32.totalorder %s29_s27, %s29_s27 }
  0x1b   :  { %p243_p11 = scmp.ne.s32.totalorder %s29_s27, %s242_s8  ;;  %p248_p13 = scmp.lt.s32.totalorder %s242_s8, %s242_s8 }
  0x1d   :  { %p249_p0 = por %p248_p13, %p247_p12 }
  0x1f   :  { %p250_p1 = pnand %p249_p0, %p243_p11 }
  0x21   :  { %253 = shalt.err (!%p250_p1)
}
  0x22   :  { %34 = dma.hbm_to_vmem [thread:$0]  %s356_s1, 512, %s29_s27, [#allocation7], %s283_s22, %s283_s22, %s284_s23  }
  0x23   :  { %276 = dma.done.wait [#allocation4], 256  }
  0x24   :  { %277 = vsyncadd [#allocation4], 4294967040 }
  0x25   :  { %278 = dma.done.wait [#allocation7], 512  }
  0x26   :  { %279 = vsyncadd [#allocation7], 4294966784  ;;  %vm57_vm0 = vcmask 261120   ;;  %v53_v0 = vld [vmem:[#allocation6] sm:$0xff]  ;;  %v54_v1 = vld [vmem:[#allocation6 + $0x8] sm:$0xff]  ;;  %s286_s11 = smov [#allocation8]  }
  0x27   :  { %v55_v2 = vld [vmem:[#allocation6 + $0x10] sm:$0xff]  ;;  %v197_v3 = vpack.c.bf16 %v54_v1, %v53_v0  ;;  %v56_v4 = vld [vmem:[#allocation6 + $0x18] sm:$0xff]  ;;  %s164_s12 = sshll.u32 %s286_s11, 4  ;;  %s165_s12 = int_to_ptr.vmem [resolvable:$true] %s164_s12 }
  0x28   :  { %v49_v5 = vld [vmem:[#allocation3] sm:$0xff]  ;;  %v201_v6 = vpack.c.bf16 %v56_v4, %v55_v2  ;;  %v50_v7 = vld [vmem:[#allocation3 + $0x8] sm:$0xff]  ;;  %s254_s13 = scalar_lea.vmem %s165_s12, 256  ;;  %p259_p3 = scmp.lt.s32.totalorder %s165_s12, %s165_s12 }
  0x29   :  { %194 = vmatprep.mubr.msk.f32.mxu0 %vm57_vm0, %v49_v5  ;;  %198 = vmatprep.subr.bf16.mxu0 %v197_v3  ;;  %v179_v8 = vld [vmem:[%s357_s2] ss:$0 sm:$0xff]  ;;  %p255_p2 = scmp.ne.s32.totalorder %s165_s12, %s254_s13  ;;  %p260_p4 = scmp.lt.s32.totalorder %s254_s13, %s254_s13 }
  0x2a   :  { %200 = vmatpush3.bf16.msra.mxu0 %v197_v3 }
  0x2b   :  { %202 = vmatprep.subr.bf16.mxu0 %v201_v6  ;;  %p261_p5 = por %p260_p4, %p259_p3 }
  0x2d   :  { %p262_p6 = pnand %p261_p5, %p255_p2 }
  0x2e   :  { %204 = vmatpush3.bf16.msra.mxu0 %v201_v6 }
  0x31   :  { %195 = vmatmul.mubr.msk.f32.vlgmr.msra.gmra.mrb[0].mxu0 %vm57_vm0, %v50_v7 }
 0x104   :  { %v196_v9 = vpop.f32.mrb[0].mxu0 }
 0x105   :  { %v156_v10 = vadd.f32 %v196_v9, %v179_v8  ;;  %v130_v11 = vpop.f32.mrb[1].mxu0 }
 0x106   :  { %v155_v12 = vadd.f32 %v179_v8, %v130_v11 }
 0x107   :  { %158 = vst [vmem:[#allocation8 + $0x8] sm:$0xff] %v156_v10 }
 0x108   :  { %157 = vst [vmem:[#allocation8] sm:$0xff] %v155_v12 }
 0x109   :  { %265 = shalt.err (!%p262_p6)
}
 0x10a   :  { %s266_s2 = scalar_lea.hbm %s358_s3, 256 }
 0x10b   :  { %p267_p7 = scmp.ne.s32.totalorder %s358_s3, %s266_s2  ;;  %p270_p8 = scmp.lt.u32.totalorder %s266_s2, %s358_s3 }
 0x10d   :  { %p272_p9 = pnand %p270_p8, %p267_p7 }
 0x10f   :  { %275 = shalt.err (!%p272_p9)
}
 0x110   :  { %170 = dma.vmem_to_hbm [thread:$0]  %s165_s12, 256, %s358_s3, [#allocation5], %s283_s22, %s283_s22, %s284_s23  }
 0x111   :  { %280 = dma.done.wait [#allocation5], 256  }
 0x112   :  { %281 = vsyncadd [#allocation5], 4294967040 }
 0x113   :  { %174 = vsyncpa [#allocation4], 1 }
 0x114   :  { %175 = vsyncpa [#allocation7], 1 }
 0x115   :  { %176 = vsyncpa [#allocation5], 1 }

</bundles_post_ra>
